<compile_context>
chip_gen: v7x
topology: tpu7x:2x2x1
jax: 0.10.0
libtpu: 0.0.40
codegen_flags: <defaults>
</compile_context>

<pallas_src>
import jax
import jax.numpy as jnp
from jax.experimental import pallas as pl
from jax.experimental.pallas import tpu as pltpu

_LANE = 128
_SUBLANE = 8


def _round_up(x, m):
    return ((x + m - 1) // m) * m


def _tpu_generation_params():
    """Returns (usable_vmem_budget_bytes, vmem_limit_bytes, num_tensorcores)."""
    vmem_cap = None
    try:
        vmem_cap = int(pltpu.get_tpu_info().vmem_capacity_bytes)
    except Exception:
        vmem_cap = None
    if vmem_cap is None:
        kind = ""
        try:
            kind = jax.devices()[0].device_kind.lower()
        except Exception:
            pass
        vmem_cap = 64 * 1024 * 1024 if "v7" in kind else 128 * 1024 * 1024
    if vmem_cap <= 64 * 1024 * 1024:
        # v7x: 64 MiB physical VMEM per TensorCore, 2 TCs per chip.
        return 26 * 1024 * 1024, 32 * 1024 * 1024, 2
    # v5e / v6e: 128 MiB physical VMEM, 1 TensorCore per chip.
    return 56 * 1024 * 1024, 64 * 1024 * 1024, 1


# ------------------------------------------------------------------- kernels --
def _train_kernel(pooled_ref, emb_ref, sel_ref, out_ref):
    # pooled_ref: (bb, Q, D)   batch chunk of pooled features
    # emb_ref:    (2, Q, D)    [0] = per-query class embedding, [1] = background embedding
    # sel_ref:    (Q, L) i32   0 -> -inf, 1 -> class_sim column, 2 -> bg_sim column
    # out_ref:    (bb, Q, L)   L = lane-padded (num_classes + 1)
    p = pooled_ref[...].astype(jnp.float32)               # (bb, Q, D)
    ce = emb_ref[0].astype(jnp.float32)                    # (Q, D)
    be = emb_ref[1].astype(jnp.float32)                    # (Q, D)

    # Explicit f32 accumulation over D (robust to bf16 inputs).
    # TODO(synk): if profiling at large bb shows this XLU-bound, move the
    # D-contraction onto the idle MXU via a per-query (Q, D, L) folded weight.
    class_sim = jnp.sum(p * ce[None, :, :], axis=-1, keepdims=True)  # (bb, Q, 1)
    bg_sim = jnp.sum(p * be[None, :, :], axis=-1, keepdims=True)     # (bb, Q, 1)

    sel = sel_ref[...][None, :, :]                          # (1, Q, L)
    neg_inf = jnp.float32(float("-inf"))
    logits = jnp.where(sel == 1, class_sim, neg_inf)        # scatter class_sim
    logits = jnp.where(sel == 2, bg_sim, logits)            # background column
    out_ref[...] = logits.astype(out_ref.dtype)             # lane-dense store


def _eval_kernel(x_ref, w_ref, out_ref):
    # x_ref: (mb, D)   flattened (batch*queries) rows
    # w_ref: (D, L)    pre-transposed, zero-padded weight
    # out_ref: (mb, L)
    out_ref[...] = jnp.dot(
        x_ref[...], w_ref[...], preferred_element_type=jnp.float32
    ).astype(out_ref.dtype)


# --------------------------------------------------------------------- module --
class CodebookContrastiveHead3:
    """JAX/Pallas port of the PyTorch CodebookContrastiveHead3 module."""

    def __init__(self, num_classes=19, queries_per_class=5, embedding_dim=256, *, key):
        self.num_classes = num_classes
        self.queries_per_class = queries_per_class
        self.embedding_dim = embedding_dim
        self.total_queries = num_classes * queries_per_class
        # nn.Embedding(num_classes * 2, embedding_dim), init normal(std=0.02)
        self.class_embeddings = 0.02 * jax.random.normal(
            key, (num_classes * 2, embedding_dim), dtype=jnp.float32
        )
        # arange(num_classes).repeat_interleave(queries_per_class) -> [total_queries]
        self.class_indices = jnp.repeat(
            jnp.arange(num_classes, dtype=jnp.int32), queries_per_class
        )
        assert int(self.class_indices.max()) < num_classes

        self._train_lanes = _round_up(num_classes + 1, _LANE)
        self._eval_lanes = _round_up(num_classes, _LANE)
        self._budget, self._vmem_limit, self._num_tc = _tpu_generation_params()
        self._build_derived()

    def _build_derived(self):
        """Static, embedding-dependent tensors.  Re-run if class_embeddings change."""
        N, Q, D = self.num_classes, self.total_queries, self.embedding_dim
        Lt, Le = self._train_lanes, self._eval_lanes

        # Batch-invariant one-hot select codes, lane-padded to a multiple of 128.
        col = jnp.arange(Lt, dtype=jnp.int32)[None, :]                     # (1, Lt)
        sel = jnp.where(col == self.class_indices[:, None], 1, 0).astype(jnp.int32)
        sel = jnp.where(col == N, 2, sel)  # bg column overrides (matches torch order)
        self._sel = sel                                                     # (Q, Lt) i32

        # Train: class/background embeddings stacked into one (2, Q, D) input.
        class_emb = self.class_embeddings[self.class_indices]               # (Q, D)
        bg_emb = self.class_embeddings[self.class_indices + N]              # (Q, D)
        self._emb = jnp.stack([class_emb, bg_emb], axis=0)                  # (2, Q, D)

        # Eval: pre-transposed, lane-padded weight (D, Le) so the MXU contracts
        # last dims directly with no in-kernel transpose.
        w = jnp.zeros((D, Le), dtype=self.class_embeddings.dtype)
        self._w_eval = w.at[:, :N].set(self.class_embeddings[:N].T)

    # ------------------------------------------------------------------ train --
    def _forward_train(self, pooled):
        B, Q, D = pooled.shape
        assert Q == self.total_queries, "training path requires Q == num_classes * queries_per_class"
        L = self._train_lanes
        in_item = pooled.dtype.itemsize

        # VMEM accounting: double-buffered per-step blocks + double-buffered
        # resident emb / sel blocks (constant index_map is still 2-buffered).
        row_bytes = Q * D * in_item + Q * L * 4
        resident = 2 * (2 * Q * D * self._emb.dtype.itemsize + Q * L * 4)
        avail = max(self._budget - resident, 2 * row_bytes)
        bb_max = max(1, avail // (2 * row_bytes))

        if self._num_tc >= 2:
            # >=2 parallel grid steps so both TensorCores get work (v7x).
            bb = min(bb_max, max(1, -(-B // 2)))
        else:
            # Single fat block on v5e/v6e when it fits.
            bb = min(bb_max, B)
        b_pad = _round_up(B, bb)
        x = pooled if b_pad == B else jnp.pad(pooled, ((0, b_pad - B), (0, 0), (0, 0)))
        grid_b = b_pad // bb

        bytes_accessed = (
            b_pad * Q * D * in_item          # pooled
            + 2 * Q * D * self._emb.dtype.itemsize
            + Q * L * 4                      # sel
            + b_pad * Q * L * 4              # out
        )
        cost = pl.CostEstimate(
            flops=int(4 * b_pad * Q * D),    # two mul+add reductions over D
            transcendentals=0,
            bytes_accessed=int(bytes_accessed),
        )

        out = pl.pallas_call(
            _train_kernel,
            out_shape=jax.ShapeDtypeStruct((b_pad, Q, L), jnp.float32),
            grid=(grid_b,),
            in_specs=[
                pl.BlockSpec((bb, Q, D), lambda i: (i, 0, 0)),
                pl.BlockSpec((2, Q, D), lambda i: (0, 0, 0)),
                pl.BlockSpec((Q, L), lambda i: (0, 0)),
            ],
            out_specs=pl.BlockSpec((bb, Q, L), lambda i: (i, 0, 0)),
            compiler_params=pltpu.CompilerParams(
                dimension_semantics=("parallel",),
                vmem_limit_bytes=self._vmem_limit,
            ),
            cost_estimate=cost,
        )(x, self._emb, self._sel)
        return out[:B, :, : self.num_classes + 1]

    # ------------------------------------------------------------------- eval --
    def _forward_eval(self, pooled):
        B, Q, D = pooled.shape
        N = self.num_classes
        L = self._eval_lanes
        w = self._w_eval                      # (D, L), built once in __init__
        in_item = pooled.dtype.itemsize

        # Fold batch into the matmul M dimension: (B*Q, D) @ (D, L).
        M = B * Q
        x = pooled.reshape(M, D)

        row_bytes = D * in_item + L * 4
        resident = 2 * D * L * w.dtype.itemsize
        avail = max(self._budget - resident, 2 * _SUBLANE * row_bytes)
        mb_max = max(_SUBLANE, (avail // (2 * row_bytes)) // _SUBLANE * _SUBLANE)

        m8 = _round_up(M, _SUBLANE)           # 8-aligned sublane tiles (e.g. 190 -> 192)
        if self._num_tc >= 2:
            target = _round_up(-(-m8 // 2), _SUBLANE)   # >=2 grid steps on v7x
        else:
            target = m8                                 # single fat block on v5e/v6e
        mb = min(mb_max, target)
        m_pad = _round_up(M, mb)              # mb is a multiple of 8 -> m_pad is too
        if m_pad != M:
            x = jnp.pad(x, ((0, m_pad - M), (0, 0)))
        grid_m = m_pad // mb

        cost = pl.CostEstimate(
            flops=int(2 * m_pad * D * L),
            transcendentals=0,
            bytes_accessed=int(m_pad * D * in_item + D * L * w.dtype.itemsize + m_pad * L * 4),
        )

        out = pl.pallas_call(
            _eval_kernel,
            out_shape=jax.ShapeDtypeStruct((m_pad, L), jnp.float32),
            grid=(grid_m,),
            in_specs=[
                pl.BlockSpec((mb, D), lambda i: (i, 0)),
                pl.BlockSpec((D, L), lambda i: (0, 0)),
            ],
            out_specs=pl.BlockSpec((mb, L), lambda i: (i, 0)),
            compiler_params=pltpu.CompilerParams(
                dimension_semantics=("parallel",),
                vmem_limit_bytes=self._vmem_limit,
            ),
            cost_estimate=cost,
        )(x, w)
        return out[:M, :N].reshape(B, Q, N)

    def __call__(self, pooled_features, is_training=True):
        if is_training:
            return self._forward_train(pooled_features)
        return self._forward_eval(pooled_features)


# --------------------------------------------------------------------- checks --
def _reference_train(head, pooled):
    B, Q, _ = pooled.shape
    class_emb = head.class_embeddings[head.class_indices]
    bg_emb = head.class_embeddings[head.class_indices + head.num_classes]
    class_sim = jnp.einsum("bqd,qd->bq", pooled, class_emb)
    bg_sim = jnp.einsum("bqd,qd->bq", pooled, bg_emb)
    cp1 = head.num_classes + 1
    col = jnp.arange(cp1)[None, None, :]
    idx = head.class_indices[None, :, None]
    logits = jnp.full((B, Q, cp1), float("-inf"), dtype=jnp.float32)
    logits = jnp.where(col == idx, class_sim[..., None], logits)
    logits = logits.at[:, :, head.num_classes].set(bg_sim)
    return logits


def _reference_eval(head, pooled):
    return jnp.einsum("bqd,nd->bqn", pooled, head.class_embeddings[: head.num_classes])


if __name__ == "__main__":
    key = jax.random.PRNGKey(0)
    k_emb, k_x = jax.random.split(key)

    num_classes, queries_per_class, embedding_dim = 19, 5, 256
    batch_size = 2
    total_queries = num_classes * queries_per_class  # 95

    head = CodebookContrastiveHead3(num_classes, queries_per_class, embedding_dim, key=k_emb)
    pooled = jax.random.normal(
        k_x, (batch_size, total_queries, embedding_dim), dtype=jnp.float32
    )

    # Training path
    logits_train = jax.block_until_ready(head(pooled, is_training=True))
    ref_train = _reference_train(head, pooled)
    assert logits_train.shape == (batch_size, total_queries, num_classes + 1)
    assert bool(jnp.allclose(logits_train, ref_train, atol=1e-5, rtol=1e-5))

    # Eval path
    logits_eval = jax.block_until_ready(head(pooled, is_training=False))
    ref_eval = _reference_eval(head, pooled)
    assert logits_eval.shape == (batch_size, total_queries, num_classes)
    assert bool(jnp.allclose(logits_eval, ref_eval, atol=1e-4, rtol=1e-4))

    print("KERNEL_OK")
</pallas_src>

<mosaic_0001>
module attributes {stable_mosaic.version = 11 : i64} {
  func.func @_train_kernel(%arg0: i32, %arg1: memref<2x95x256xf32, #tpu.memory_space<vmem>>, %arg2: memref<2x95x256xf32, #tpu.memory_space<vmem>>, %arg3: memref<95x128xi32, #tpu.memory_space<vmem>>, %arg4: memref<2x95x128xf32, #tpu.memory_space<vmem>>) attributes {dimension_semantics = [#tpu.dimension_semantics<parallel>], iteration_bounds = array<i64: 1>, scalar_prefetch = 0 : i64, scratch_operands = 0 : i64, tpu.core_type = #tpu.core_type<tc>, window_params = [{transform_indices = @transform_0, window_bounds = array<i64: 2, 95, 256>}, {pipeline_mode = #tpu.pipeline_mode<synchronous>, transform_indices = @transform_1, window_bounds = array<i64: 2, 95, 256>}, {pipeline_mode = #tpu.pipeline_mode<synchronous>, transform_indices = @transform_2, window_bounds = array<i64: 95, 128>}, {transform_indices = @transform_3, window_bounds = array<i64: 2, 95, 128>}]} {
    %c0 = arith.constant 0 : index
    %c0_0 = arith.constant 0 : index
    %c0_1 = arith.constant 0 : index
    %0 = vector.load %arg1[%c0, %c0_0, %c0_1] : memref<2x95x256xf32, #tpu.memory_space<vmem>>, vector<2x95x256xf32>
    %c0_2 = arith.constant 0 : index
    %c0_3 = arith.constant 0 : index
    %c0_4 = arith.constant 0 : index
    %1 = vector.load %arg2[%c0_2, %c0_3, %c0_4] : memref<2x95x256xf32, #tpu.memory_space<vmem>>, vector<1x95x256xf32>
    %2 = vector.shape_cast %1 : vector<1x95x256xf32> to vector<95x256xf32>
    %c1 = arith.constant 1 : index
    %c0_5 = arith.constant 0 : index
    %c0_6 = arith.constant 0 : index
    %3 = vector.load %arg2[%c1, %c0_5, %c0_6] : memref<2x95x256xf32, #tpu.memory_space<vmem>>, vector<1x95x256xf32>
    %4 = vector.shape_cast %3 : vector<1x95x256xf32> to vector<95x256xf32>
    %5 = vector.shape_cast %2 : vector<95x256xf32> to vector<1x95x256xf32>
    %6 = vector.broadcast %5 : vector<1x95x256xf32> to vector<2x95x256xf32>
    %7 = arith.mulf %0, %6 : vector<2x95x256xf32>
    %cst = arith.constant dense<0.000000e+00> : vector<2x95xf32>
    %8 = vector.multi_reduction <add>, %7, %cst [2] : vector<2x95x256xf32> to vector<2x95xf32>
    %9 = vector.shape_cast %8 : vector<2x95xf32> to vector<2x95x1xf32>
    %10 = vector.shape_cast %4 : vector<95x256xf32> to vector<1x95x256xf32>
    %11 = vector.broadcast %10 : vector<1x95x256xf32> to vector<2x95x256xf32>
    %12 = arith.mulf %0, %11 : vector<2x95x256xf32>
    %cst_7 = arith.constant dense<0.000000e+00> : vector<2x95xf32>
    %13 = vector.multi_reduction <add>, %12, %cst_7 [2] : vector<2x95x256xf32> to vector<2x95xf32>
    %14 = vector.shape_cast %13 : vector<2x95xf32> to vector<2x95x1xf32>
    %c0_8 = arith.constant 0 : index
    %c0_9 = arith.constant 0 : index
    %15 = vector.load %arg3[%c0_8, %c0_9] : memref<95x128xi32, #tpu.memory_space<vmem>>, vector<95x128xi32>
    %16 = vector.shape_cast %15 : vector<95x128xi32> to vector<1x95x128xi32>
    %c1_i32 = arith.constant 1 : i32
    %17 = vector.broadcast %c1_i32 : i32 to vector<1x95x128xi32>
    %18 = arith.cmpi eq, %16, %17 : vector<1x95x128xi32>
    %cst_10 = arith.constant 0xFF800000 : f32
    %19 = vector.shape_cast %18 : vector<1x95x128xi1> to vector<1x95x128xi1>
    %20 = vector.broadcast %19 : vector<1x95x128xi1> to vector<2x95x128xi1>
    %21 = vector.shape_cast %9 : vector<2x95x1xf32> to vector<2x95x1xf32>
    %22 = vector.broadcast %21 : vector<2x95x1xf32> to vector<2x95x128xf32>
    %23 = vector.broadcast %cst_10 : f32 to vector<2x95x128xf32>
    %24 = arith.select %20, %22, %23 : vector<2x95x128xi1>, vector<2x95x128xf32>
    %c2_i32 = arith.constant 2 : i32
    %25 = vector.broadcast %c2_i32 : i32 to vector<1x95x128xi32>
    %26 = arith.cmpi eq, %16, %25 : vector<1x95x128xi32>
    %27 = vector.shape_cast %26 : vector<1x95x128xi1> to vector<1x95x128xi1>
    %28 = vector.broadcast %27 : vector<1x95x128xi1> to vector<2x95x128xi1>
    %29 = vector.shape_cast %14 : vector<2x95x1xf32> to vector<2x95x1xf32>
    %30 = vector.broadcast %29 : vector<2x95x1xf32> to vector<2x95x128xf32>
    %31 = arith.select %28, %30, %24 : vector<2x95x128xi1>, vector<2x95x128xf32>
    %c0_11 = arith.constant 0 : index
    %c0_12 = arith.constant 0 : index
    %c0_13 = arith.constant 0 : index
    %32 = vector.load %arg4[%c0_11, %c0_12, %c0_13] : memref<2x95x128xf32, #tpu.memory_space<vmem>>, vector<2x95x128xf32>
    tpu.vector_store %arg4[%c0_11, %c0_12, %c0_13], %31 {strides = array<i32>} : memref<2x95x128xf32, #tpu.memory_space<vmem>>, vector<2x95x128xf32>,
    return
  }
  func.func @transform_0(%arg0: i32) -> (i32, i32, i32) {
    %c0_i32 = arith.constant 0 : i32
    %c0_i32_0 = arith.constant 0 : i32
    %c0_i32_1 = arith.constant 0 : i32
    return %arg0, %c0_i32, %c0_i32_0 : i32, i32, i32
  }
  func.func @transform_1(%arg0: i32) -> (i32, i32, i32) {
    %c0_i32 = arith.constant 0 : i32
    %c0_i32_0 = arith.constant 0 : i32
    %c0_i32_1 = arith.constant 0 : i32
    %c0_i32_2 = arith.constant 0 : i32
    return %c0_i32, %c0_i32_0, %c0_i32_1 : i32, i32, i32
  }
  func.func @transform_2(%arg0: i32) -> (i32, i32) {
    %c0_i32 = arith.constant 0 : i32
    %c0_i32_0 = arith.constant 0 : i32
    %c0_i32_1 = arith.constant 0 : i32
    return %c0_i32, %c0_i32_0 : i32, i32
  }
  func.func @transform_3(%arg0: i32) -> (i32, i32, i32) {
    %c0_i32 = arith.constant 0 : i32
    %c0_i32_0 = arith.constant 0 : i32
    %c0_i32_1 = arith.constant 0 : i32
    return %arg0, %c0_i32, %c0_i32_0 : i32, i32, i32
  }
}

</mosaic_0001>

<bundles_post_ra>
// kernel: tpu_custom_call.1
= control target key start
LH: loop header
LB: loop body
LE: loop exit
PB: predicated region body
PF: predicated region fallthrough
CT: control target
= control target key end

     0   :  { %8 = vsyncpa [#allocation3], 0  ;;  %s1325_s0 = inlined_call_operand.hbm [shape: f32[2,95,256], index: 0, kind: input, shape index: {}]   ;;  %s1326_s1 = inlined_call_operand.hbm [shape: f32[2,95,256], index: 1, kind: input, shape index: {}]   ;;  %s1327_s2 = inlined_call_operand.hbm [shape: s32[95,128], index: 2, kind: input, shape index: {}]   ;;  %s1328_s3 = inlined_call_operand.hbm [shape: f32[2,95,128], index: 3, kind: output, shape index: {}]  }
   0x1   :  { %9 = vsyncpa [#allocation6], 0 }
   0x2   :  { %10 = vsyncpa [#allocation4], 0  ;;  %s678_s12 = smov [#allocation5]   ;;  %s679_s14 = smov [#allocation2]  }
   0x3   :  { %s28_s13 = sshll.u32 %s678_s12, 4  ;;  %s16_s15 = sshll.u32 %s679_s14, 4  ;;  %s29_s13 = int_to_ptr.vmem [resolvable:$true] %s28_s13  ;;  %s706_s15 = int_to_ptr.vmem [resolvable:$true] %s16_s15 }
   0x4   :  { %s584_s18 = scalar_lea.hbm %s1326_s1, 6144 }
   0x5   :  { %p585_p0 = scmp.ne.s32.totalorder %s1326_s1, %s584_s18  ;;  %p588_p1 = scmp.lt.u32.totalorder %s584_s18, %s1326_s1 }
   0x7   :  { %p590_p2 = pnand %p588_p1, %p585_p0 }
   0x9   :  { %593 = shalt.err (!%p590_p2)
}
   0xa   :  { %s594_s23 = scalar_lea.vmem %s29_s13, 6144  ;;  %p599_p4 = scmp.lt.s32.totalorder %s29_s13, %s29_s13 }
   0xb   :  { %p595_p3 = scmp.ne.s32.totalorder %s29_s13, %s594_s23  ;;  %p600_p5 = scmp.lt.s32.totalorder %s594_s23, %s594_s23 }
   0xd   :  { %p601_p6 = por %p600_p5, %p599_p4 }
   0xf   :  { %p602_p7 = pnand %p601_p6, %p595_p3 }
  0x11   :  { %605 = shalt.err (!%p602_p7)
}
  0x12   :  { %s680_s24 = smov 256   ;;  %s681_s25 = smov 16  }
  0x13   :  { %34 = dma.hbm_to_vmem [thread:$0]  %s1326_s1, 6144, %s29_s13, [#allocation6], %s680_s24, %s680_s24, %s681_s25  }
  0x14   :  { %s606_s30 = scalar_lea.hbm %s1325_s0, 6144 }
  0x15   :  { %p607_p8 = scmp.ne.s32.totalorder %s1325_s0, %s606_s30  ;;  %p610_p9 = scmp.lt.u32.totalorder %s606_s30, %s1325_s0 }
  0x17   :  { %p612_p10 = pnand %p610_p9, %p607_p8 }
  0x19   :  { %615 = shalt.err (!%p612_p10)
}
  0x1a   :  { %s616_s8 = scalar_lea.vmem %s706_s15, 6144  ;;  %p621_p12 = scmp.lt.s32.totalorder %s706_s15, %s706_s15 }
  0x1b   :  { %p617_p11 = scmp.ne.s32.totalorder %s706_s15, %s616_s8  ;;  %p622_p13 = scmp.lt.s32.totalorder %s616_s8, %s616_s8 }
  0x1d   :  { %p623_p0 = por %p622_p13, %p621_p12 }
  0x1f   :  { %p624_p1 = pnand %p623_p0, %p617_p11 }
  0x21   :  { %627 = shalt.err (!%p624_p1)
}
  0x22   :  { %22 = dma.hbm_to_vmem [thread:$0]  %s1325_s0, 6144, %s706_s15, [#allocation3], %s680_s24, %s680_s24, %s681_s25  }
  0x23   :  { %s682_s10 = smov [#allocation7]   ;;  %s628_s14 = scalar_lea.hbm %s1327_s2, 1536 }
  0x24   :  { %s40_s11 = sshll.u32 %s682_s10, 4  ;;  %p629_p2 = scmp.ne.s32.totalorder %s1327_s2, %s628_s14  ;;  %s41_s11 = int_to_ptr.vmem [resolvable:$true] %s40_s11 }
  0x25   :  { %p632_p3 = scmp.lt.u32.totalorder %s628_s14, %s1327_s2 }
  0x27   :  { %p634_p4 = pnand %p632_p3, %p629_p2 }
  0x29   :  { %637 = shalt.err (!%p634_p4)
}
  0x2a   :  { %s638_s20 = scalar_lea.vmem %s41_s11, 1536  ;;  %p643_p6 = scmp.lt.s32.totalorder %s41_s11, %s41_s11 }
  0x2b   :  { %p639_p5 = scmp.ne.s32.totalorder %s41_s11, %s638_s20  ;;  %p644_p7 = scmp.lt.s32.totalorder %s638_s20, %s638_s20 }
  0x2d   :  { %p645_p8 = por %p644_p7, %p643_p6 }
  0x2f   :  { %p646_p9 = pnand %p645_p8, %p639_p5 }
  0x31   :  { %649 = shalt.err (!%p646_p9)
}
  0x32   :  { %s683_s0 = smov 128   ;;  %s684_s15 = smov 8  }
  0x33   :  { %46 = dma.hbm_to_vmem [thread:$0]  %s1327_s2, 1536, %s41_s11, [#allocation6], %s683_s0, %s683_s0, %s684_s15  }
  0x34   :  { %672 = dma.done.wait [#allocation3], 6144  }
  0x35   :  { %673 = vsyncadd [#allocation3], 4294961152 }
  0x36   :  { %674 = dma.done.wait [#allocation6], 7680  }
  0x37   :  { %675 = vsyncadd [#allocation6], 4294959616  ;;  %v752_v0 = vld [vmem:[#allocation2 + $0x20] sm:$0xff]  ;;  %v754_v1 = vld [vmem:[#allocation2 + $0x28] sm:$0xff]  ;;  %vm234_vm0 = vcmask 1046528   ;;  %s685_s2 = smov [#allocation8]  }
  0x38   :  { %v756_v2 = vld [vmem:[#allocation5 + $0x20] sm:$0xff]  ;;  %v758_v3 = vld [vmem:[#allocation5 + $0x28] sm:$0xff]  ;;  %v772_v10 = vld [vmem:[#allocation2 + $0x30] sm:$0xff]  ;;  %s563_s23 = sshll.u32 %s685_s2, 4  ;;  %s564_s23 = int_to_ptr.vmem [resolvable:$true] %s563_s23 }
  0x39   :  { %v157_v4 = vmul.f32 %v756_v2, %v752_v0  ;;  %v762_v5 = vld [vmem:[#allocation2] sm:$0xff]  ;;  %v764_v6 = vld [vmem:[#allocation2 + $0x8] sm:$0xff]  ;;  %v158_v7 = vmul.f32 %v758_v3, %v754_v1  ;;  %v778_v13 = vld [vmem:[#allocation2 + $0x38] sm:$0xff]  ;;  %s650_s24 = scalar_lea.vmem %s564_s23, 3072  ;;  %p655_p11 = scmp.lt.s32.totalorder %s564_s23, %s564_s23 }
  0x3a   :  { %v768_v8 = vld [vmem:[#allocation5] sm:$0xff]  ;;  %v770_v9 = vld [vmem:[#allocation5 + $0x8] sm:$0xff]  ;;  %v780_v14 = vld [vmem:[#allocation5 + $0x30] sm:$0xff]  ;;  %p651_p10 = scmp.ne.s32.totalorder %s564_s23, %s650_s24  ;;  %p656_p12 = scmp.lt.s32.totalorder %s650_s24, %s650_s24 }
  0x3b   :  { %v153_v11 = vmul.f32 %v768_v8, %v762_v5  ;;  %v154_v12 = vmul.f32 %v770_v9, %v764_v6  ;;  %v782_v15 = vld [vmem:[#allocation5 + $0x38] sm:$0xff]  ;;  %v207_v16 = vadd.f32 %v158_v7, %v157_v4  ;;  %v159_v17 = vmul.f32 %v780_v14, %v772_v10  ;;  %v788_v19 = vld [vmem:[#allocation2 + $0x10] sm:$0xff]  ;;  %v808_v31 = vld [vmem:[#allocation2 + $0x40] sm:$0xff] }
  0x3c   :  { %v160_v18 = vmul.f32 %v782_v15, %v778_v13  ;;  %v790_v20 = vld [vmem:[#allocation2 + $0x18] sm:$0xff]  ;;  %v792_v21 = vld [vmem:[#allocation5 + $0x10] sm:$0xff]  ;;  %v814_v34 = vld [vmem:[#allocation2 + $0x48] sm:$0xff]  ;;  %p657_p13 = por %p656_p12, %p655_p11 }
  0x3d   :  { %v201_v22 = vadd.f32 %v154_v12, %v153_v11  ;;  %v794_v23 = vld [vmem:[#allocation5 + $0x18] sm:$0xff]  ;;  %v155_v24 = vmul.f32 %v792_v21, %v788_v19  ;;  %v798_v25 = vld [vmem:[#allocation2 + $0x50] sm:$0xff]  ;;  %208 = vadd.xlane.f32.xlu1 %v207_v16  ;;  %v816_v35 = vld [vmem:[#allocation5 + $0x40] sm:$0xff] }
  0x3e   :  { %v800_v26 = vld [vmem:[#allocation2 + $0x58] sm:$0xff]  ;;  %v210_v27 = vadd.f32 %v160_v18, %v159_v17  ;;  %v156_v28 = vmul.f32 %v794_v23, %v790_v20  ;;  %v804_v29 = vld [vmem:[#allocation5 + $0x50] sm:$0xff]  ;;  %v818_v36 = vld [vmem:[#allocation5 + $0x48] sm:$0xff]  ;;  %v161_v38 = vmul.f32 %v816_v35, %v808_v31  ;;  %p658_p0 = pnand %p657_p13, %p651_p10 }
  0x3f   :  { %v806_v30 = vld [vmem:[#allocation5 + $0x58] sm:$0xff]  ;;  %202 = vadd.xlane.f32.xlu0 %v201_v22  ;;  %v163_v32 = vmul.f32 %v804_v29, %v798_v25  ;;  %v162_v39 = vmul.f32 %v818_v36, %v814_v34  ;;  %v824_v40 = vld [vmem:[#allocation2 + $0x70] sm:$0xff]  ;;  %v834_v45 = vld [vmem:[#allocation2 + $0x60] sm:$0xff] }
  0x40   :  { %v164_v33 = vmul.f32 %v806_v30, %v800_v26  ;;  %v204_v37 = vadd.f32 %v156_v28, %v155_v24  ;;  %v826_v41 = vld [vmem:[#allocation2 + $0x78] sm:$0xff]  ;;  %v828_v42 = vld [vmem:[#allocation5 + $0x70] sm:$0xff]  ;;  %v836_v46 = vld [vmem:[#allocation2 + $0x68] sm:$0xff] }
  0x41   :  { %v830_v43 = vld [vmem:[#allocation5 + $0x78] sm:$0xff]  ;;  %v167_v44 = vmul.f32 %v828_v42, %v824_v40  ;;  %211 = vadd.xlane.f32.xlu1 %v210_v27  ;;  %v840_v49 = vld [vmem:[#allocation5 + $0x60] sm:$0xff]  ;;  %v842_v50 = vld [vmem:[#allocation5 + $0x68] sm:$0xff]  ;;  %v213_v52 = vadd.f32 %v162_v39, %v161_v38 }
  0x42   :  { %v216_v47 = vadd.f32 %v164_v33, %v163_v32  ;;  %v168_v48 = vmul.f32 %v830_v43, %v826_v41  ;;  %v844_v51 = vld [vmem:[#allocation2 + $0x90] sm:$0xff]  ;;  %v165_v53 = vmul.f32 %v840_v49, %v834_v45  ;;  %v166_v54 = vmul.f32 %v842_v50, %v836_v46  ;;  %v850_v55 = vld [vmem:[#allocation2 + $0x98] sm:$0xff]  ;;  %v856_v58 = vld [vmem:[#allocation2 + $0x80] sm:$0xff] }
  0x43   :  { %205 = vadd.xlane.f32.xlu0 %v204_v37  ;;  %v852_v56 = vld [vmem:[#allocation5 + $0x90] sm:$0xff]  ;;  %v854_v57 = vld [vmem:[#allocation5 + $0x98] sm:$0xff]  ;;  %v858_v59 = vld [vmem:[#allocation2 + $0x88] sm:$0xff] }
  0x44   :  { %v860_v60 = vld [vmem:[#allocation5 + $0x80] sm:$0xff]  ;;  %v222_v61 = vadd.f32 %v168_v48, %v167_v44  ;;  %v862_v62 = vld [vmem:[#allocation5 + $0x88] sm:$0xff]  ;;  %v864_v63 = vld [vmem:[#allocation2 + $0xb0] sm:$0x7f]  ;;  %v171_v7 = vmul.f32 %v852_v56, %v844_v51  ;;  %v172_v11 = vmul.f32 %v854_v57, %v850_v55  ;;  %v219_v22 = vadd.f32 %v166_v54, %v165_v53 }
  0x45   :  { %v866_v4 = vld [vmem:[#allocation2 + $0xb8] sm:$0x7f]  ;;  %217 = vadd.xlane.f32.xlu1 %v216_v47  ;;  %v169_v12 = vmul.f32 %v860_v60, %v856_v58  ;;  %v170_v16 = vmul.f32 %v862_v62, %v858_v59  ;;  %v876_v17 = vld [vmem:[#allocation5 + $0xb0] sm:$0x7f]  ;;  %v884_v28 = vld [vmem:[#allocation2 + $0xa0] sm:$0xff] }
  0x46   :  { %1345 = vst [vmem:[#allocation12_spill] sm:$0xff] %v866_v4  ;;  %v878_v18 = vld [vmem:[#allocation5 + $0xb8] sm:$0x7f]  ;;  %v175_v24 = vmul.f32 %v876_v17, %v864_v63  ;;  %v886_v32 = vld [vmem:[#allocation2 + $0xa8] sm:$0xff]  ;;  %v888_v33 = vld [vmem:[#allocation5 + $0xa0] sm:$0xff]  ;;  %v228_v38 = vadd.f32 %v172_v11, %v171_v7 }
  0x47   :  { %214 = vadd.xlane.f32.xlu0 %v213_v52  ;;  %v176_v27 = vmul.f32 %v878_v18, %v866_v4  ;;  %1346 = vst [vmem:[#allocation13_spill] sm:$0xff] %v886_v32  ;;  %v890_v37 = vld [vmem:[#allocation5 + $0xa8] sm:$0xff]  ;;  %v225_v39 = vadd.f32 %v170_v16, %v169_v12  ;;  %v173_v48 = vmul.f32 %v888_v33, %v884_v28  ;;  %v898_v53 = vld [vmem:[#allocation2 + $0xd0] sm:$0xff]  ;;  %v900_v54 = vld [vmem:[#allocation2 + $0xd8] sm:$0xff] }
  0x48   :  { %v235_v44 = vsel %vm234_vm0, %v175_v24, 0.0  ;;  %v174_v52 = vmul.f32 %v890_v37, %v886_v32  ;;  %v902_v4 = vld [vmem:[#allocation2 + $0xc0] sm:$0xff]  ;;  %v179_v11 = vmul.f32 %v792_v21, %v898_v53  ;;  %v180_v12 = vmul.f32 %v794_v23, %v900_v54  ;;  %v916_v32 = vld [vmem:[#allocation2 + $0xf8] sm:$0xff] }
  0x49   :  { %223 = vadd.xlane.f32.xlu1 %v222_v61  ;;  %v236_v47 = vsel %vm234_vm0, %v176_v27, 0.0  ;;  %v904_v61 = vld [vmem:[#allocation2 + $0xc8] sm:$0xff]  ;;  %v914_v27 = vld [vmem:[#allocation2 + $0xf0] sm:$0xff] }
  0x4a   :  { %v237_v7 = vadd.f32 %v236_v47, %v235_v44  ;;  %v231_v16 = vadd.f32 %v174_v52, %v173_v48  ;;  %v178_v24 = vmul.f32 %v770_v9, %v904_v61  ;;  %v920_v44 = vld [vmem:[#allocation2 + $0xe8] sm:$0xff]  ;;  %v243_v21 = vadd.f32 %v180_v12, %v179_v11  ;;  %v930_v48 = vld [vmem:[#allocation2 + $0x110] sm:$0xff]  ;;  %v932_v52 = vld [vmem:[#allocation2 + $0x118] sm:$0xff] }
  0x4b   :  { %220 = vadd.xlane.f32.xlu0 %v219_v22  ;;  %v177_v22 = vmul.f32 %v768_v8, %v902_v4  ;;  %v183_v23 = vmul.f32 %v780_v14, %v914_v27  ;;  %v182_v47 = vmul.f32 %v758_v3, %v920_v44  ;;  %v936_v11 = vld [vmem:[#allocation2 + $0x108] sm:$0xff]  ;;  %v188_v12 = vmul.f32 %v806_v30, %v932_v52 }
  0x4d   :  { %229 = vadd.xlane.f32.xlu1 %v228_v38  ;;  %v918_v38 = vld [vmem:[#allocation2 + $0xe0] sm:$0xff]  ;;  %v240_v8 = vadd.f32 %v178_v24, %v177_v22  ;;  %v946_v22 = vld [vmem:[#allocation2 + $0x130] sm:$0xff]  ;;  %v948_v24 = vld [vmem:[#allocation2 + $0x138] sm:$0xff] }
  0x4e   :  { %v181_v9 = vmul.f32 %v756_v2, %v918_v38  ;;  %v191_v30 = vmul.f32 %v828_v42, %v946_v22  ;;  %v970_v42 = vld [vmem:[#allocation2 + $0x170] sm:$0x7f] }
  0x4f   :  { %226 = vadd.xlane.f32.xlu0 %v225_v39  ;;  %v184_v39 = vmul.f32 %v782_v15, %v916_v32  ;;  %v187_v15 = vmul.f32 %v804_v29, %v930_v48  ;;  %1349 = vst [vmem:[#allocation16_spill] sm:$0xff] %v970_v42 }
  0x50   :  { %v246_v2 = vadd.f32 %v182_v47, %v181_v9  ;;  %v962_v9 = vld [vmem:[#allocation2 + $0x150] sm:$0xff]  ;;  %v964_v47 = vld [vmem:[#allocation2 + $0x158] sm:$0xff] }
  0x51   :  { %238 = vadd.xlane.f32.xlu1 %v237_v7  ;;  %v934_v7 = vld [vmem:[#allocation2 + $0x100] sm:$0xff]  ;;  %v249_v14 = vadd.f32 %v184_v39, %v183_v23  ;;  %v952_v23 = vld [vmem:[#allocation2 + $0x128] sm:$0xff]  ;;  %v255_v29 = vadd.f32 %v188_v12, %v187_v15  ;;  %v192_v39 = vmul.f32 %v830_v43, %v948_v24  ;;  %v972_v12 = vld [vmem:[#allocation2 + $0x178] sm:$0x7f] }
  0x52   :  { %v185_v3 = vmul.f32 %v816_v35, %v934_v7  ;;  %1347 = vst [vmem:[#allocation14_spill] sm:$0xff] %v952_v23  ;;  %v968_v15 = vld [vmem:[#allocation2 + $0x148] sm:$0xff]  ;;  %1350 = vst [vmem:[#allocation17_spill] sm:$0xff] %v972_v12 }
  0x53   :  { %232 = vadd.xlane.f32.xlu0 %v231_v16  ;;  %v186_v16 = vmul.f32 %v818_v36, %v936_v11  ;;  %1348 = vst [vmem:[#allocation15_spill] sm:$0xff] %v968_v15  ;;  %v261_v43 = vadd.f32 %v192_v39, %v191_v30  ;;  %v986_v30 = vld [vmem:[#allocation2 + $0x160] sm:$0xff] }
  0x54   :  { %1351 = vst [vmem:[#allocation18_spill] sm:$0xff] %v986_v30 }
  0x55   :  { %244 = vadd.xlane.f32.xlu1 %v243_v21  ;;  %v950_v21 = vld [vmem:[#allocation2 + $0x120] sm:$0xff]  ;;  %v252_v35 = vadd.f32 %v186_v16, %v185_v3  ;;  %v194_v16 = vmul.f32 %v862_v62, %v968_v15 }
  0x56   :  { %v189_v36 = vmul.f32 %v840_v49, %v950_v21  ;;  %v195_v49 = vmul.f32 %v852_v56, %v962_v9  ;;  %v988_v56 = vld [vmem:[#allocation2 + $0x168] sm:$0xff] }
  0x57   :  { %241 = vadd.xlane.f32.xlu0 %v240_v8  ;;  %v190_v8 = vmul.f32 %v842_v50, %v952_v23  ;;  %v196_v50 = vmul.f32 %v854_v57, %v964_v47  ;;  %v199_v23 = vmul.f32 %v876_v17, %v970_v42  ;;  %1352 = vst [vmem:[#allocation19_spill] sm:$0xff] %v988_v56  ;;  %v150_v42 = vld [vmem:[#allocation5 + $0x168] sm:$0xff] }
  0x58   :  { %v198_v17 = vmul.f32 %v890_v37, %v988_v56  ;;  %v146_v56 = vld [vmem:[#allocation5 + $0x148] sm:$0xff] }
  0x59   :  { %250 = vadd.xlane.f32.xlu1 %v249_v14  ;;  %v966_v14 = vld [vmem:[#allocation2 + $0x140] sm:$0xff]  ;;  %v258_v3 = vadd.f32 %v190_v8, %v189_v36  ;;  %v267_v57 = vadd.f32 %v196_v50, %v195_v49  ;;  %v996_v36 = vld [vmem:[#allocation5 + $0xd0] sm:$0xff] }
  0x5a   :  { %v1000_v8 = vld [vmem:[#allocation5 + $0xc0] sm:$0xff] }
  0x5b   :  { %247 = vadd.xlane.f32.xlu0 %v246_v2  ;;  %v193_v2 = vmul.f32 %v860_v60, %v966_v14  ;;  %v197_v60 = vmul.f32 %v888_v33, %v986_v30  ;;  %v280_v33 = vmul.f32 %v996_v36, %v788_v19  ;;  %v278_v37 = vmul.f32 %v1000_v8, %v762_v5 }
  0x5d   :  { %256 = vadd.xlane.f32.xlu1 %v255_v29  ;;  %v200_v29 = vmul.f32 %v878_v18, %v972_v12  ;;  %v264_v39 = vadd.f32 %v194_v16, %v193_v2  ;;  %v998_v18 = vld [vmem:[#allocation5 + $0xd8] sm:$0xff]  ;;  %v270_v50 = vadd.f32 %v198_v17, %v197_v60  ;;  %v1032_v17 = vld [vmem:[#allocation5 + $0x100] sm:$0xff] }
  0x5e   :  { %v1014_v16 = vld [vmem:[#allocation5 + $0xf8] sm:$0xff]  ;;  %v149_v12 = vld [vmem:[#allocation5 + $0x160] sm:$0xff] }
  0x5f   :  { %253 = vadd.xlane.f32.xlu0 %v252_v35  ;;  %v273_v35 = vsel %vm234_vm0, %v199_v23, 0.0  ;;  %v274_v62 = vsel %vm234_vm0, %v200_v29, 0.0  ;;  %v281_v23 = vmul.f32 %v998_v18, %v790_v20  ;;  %v1016_v29 = vld [vmem:[#allocation5 + $0xe0] sm:$0xff]  ;;  %v285_v60 = vmul.f32 %v1014_v16, %v778_v13 }
  0x60   :  { %v275_v49 = vadd.f32 %v274_v62, %v273_v35  ;;  %v1028_v35 = vld [vmem:[#allocation5 + $0x110] sm:$0xff]  ;;  %v1030_v62 = vld [vmem:[#allocation5 + $0x118] sm:$0xff] }
  0x61   :  { %262 = vadd.xlane.f32.xlu1 %v261_v43  ;;  %v1002_v43 = vld [vmem:[#allocation5 + $0xc8] sm:$0xff]  ;;  %v329_v19 = vadd.f32 %v281_v23, %v280_v33  ;;  %v288_v13 = vmul.f32 %v1028_v35, %v798_v25  ;;  %v289_v33 = vmul.f32 %v1030_v62, %v800_v26 }
  0x62   :  { %v279_v2 = vmul.f32 %v1002_v43, %v764_v6  ;;  %v282_v6 = vmul.f32 %v1016_v29, %v752_v0 }
  0x63   :  { %259 = vadd.xlane.f32.xlu0 %v258_v3  ;;  %v1012_v3 = vld [vmem:[#allocation5 + $0xf0] sm:$0xff]  ;;  %v341_v25 = vadd.f32 %v289_v33, %v288_v13  ;;  %v152_v13 = vld [vmem:[#allocation5 + $0x178] sm:$0x7f] }
  0x64   :  { %v284_v20 = vmul.f32 %v1012_v3, %v772_v10  ;;  %v326_v5 = vadd.f32 %v279_v2, %v278_v37  ;;  %v1046_v37 = vld [vmem:[#allocation5 + $0x138] sm:$0xff]  ;;  %v1048_v2 = vld [vmem:[#allocation5 + $0x120] sm:$0xff] }
  0x65   :  { %268 = vadd.xlane.f32.xlu1 %v267_v57  ;;  %v1018_v57 = vld [vmem:[#allocation5 + $0xe8] sm:$0xff] }
  0x66   :  { %v335_v10 = vadd.f32 %v285_v60, %v284_v20  ;;  %v293_v20 = vmul.f32 %v1046_v37, %v826_v41 }
  0x67   :  { %265 = vadd.xlane.f32.xlu0 %v264_v39  ;;  %v283_v39 = vmul.f32 %v1018_v57, %v754_v1  ;;  %v286_v1 = vmul.f32 %v1032_v17, %v808_v31 }
  0x69   :  { %276 = vadd.xlane.f32.xlu1 %v275_v49  ;;  %v1034_v49 = vld [vmem:[#allocation5 + $0x108] sm:$0xff]  ;;  %v332_v0 = vadd.f32 %v283_v39, %v282_v6  ;;  %v148_v6 = vld [vmem:[#allocation5 + $0x158] sm:$0xff]  ;;  %v145_v39 = vld [vmem:[#allocation5 + $0x140] sm:$0xff] }
  0x6a   :  { %v287_v23 = vmul.f32 %v1034_v49, %v814_v34  ;;  %v290_v34 = vmul.f32 %v1048_v2, %v834_v45  ;;  %v297_v41 = vmul.f32 %v148_v6, %v850_v55  ;;  %v295_v45 = vmul.f32 %v146_v56, %v858_v59 }
  0x6b   :  { %271 = vadd.xlane.f32.xlu0 %v270_v50  ;;  %v1044_v50 = vld [vmem:[#allocation5 + $0x130] sm:$0xff] }
  0x6c   :  { %v292_v26 = vmul.f32 %v1044_v50, %v824_v40  ;;  %v338_v31 = vadd.f32 %v287_v23, %v286_v1  ;;  %v1353_v23 = vld [vmem:[#allocation12_spill] sm:$0xff] }
  0x6d   :  { %330 = vadd.xlane.f32.xlu1 %v329_v19  ;;  %v1050_v19 = vld [vmem:[#allocation5 + $0x128] sm:$0xff]  ;;  %v301_v30 = vmul.f32 %v152_v13, %v1353_v23 }
  0x6e   :  { %v291_v60 = vmul.f32 %v1050_v19, %v836_v46  ;;  %v347_v33 = vadd.f32 %v293_v20, %v292_v26  ;;  %v1354_v26 = vld [vmem:[#allocation13_spill] sm:$0xff] }
  0x6f   :  { %327 = vadd.xlane.f32.xlu0 %v326_v5  ;;  %v147_v5 = vld [vmem:[#allocation5 + $0x150] sm:$0xff]  ;;  %v299_v20 = vmul.f32 %v150_v42, %v1354_v26 }
  0x70   :  { %v296_v40 = vmul.f32 %v147_v5, %v844_v51  ;;  %v344_v1 = vadd.f32 %v291_v60, %v290_v34  ;;  %v303_v60 = vmul.f32 %v1002_v43, %v904_v61  ;;  %v312_v61 = vmul.f32 %v1028_v35, %v930_v48  ;;  %v1356_v35 = vld [vmem:[#allocation15_spill] sm:$0xff] }
  0x71   :  { %336 = vadd.xlane.f32.xlu1 %v335_v10  ;;  %v151_v10 = vld [vmem:[#allocation5 + $0x170] sm:$0x7f]  ;;  %v317_v43 = vmul.f32 %v1046_v37, %v948_v24  ;;  %v319_v24 = vmul.f32 %v146_v56, %v1356_v35 }
  0x72   :  { %v300_v46 = vmul.f32 %v151_v10, %v864_v63  ;;  %v353_v15 = vadd.f32 %v297_v41, %v296_v40  ;;  %v304_v63 = vmul.f32 %v996_v36, %v898_v53  ;;  %v307_v36 = vmul.f32 %v1018_v57, %v920_v44  ;;  %v1359_v37 = vld [vmem:[#allocation18_spill] sm:$0xff] }
  0x73   :  { %333 = vadd.xlane.f32.xlu0 %v332_v0  ;;  %v294_v0 = vmul.f32 %v145_v39, %v856_v58  ;;  %v360_v58 = vsel %vm234_vm0, %v301_v30, 0.0  ;;  %v316_v44 = vmul.f32 %v1044_v50, %v946_v22  ;;  %v318_v57 = vmul.f32 %v145_v39, %v966_v14 }
  0x74   :  { %v359_v55 = vsel %vm234_vm0, %v300_v46, 0.0 }
  0x75   :  { %342 = vadd.xlane.f32.xlu1 %v341_v25  ;;  %v298_v25 = vmul.f32 %v149_v12, %v884_v28  ;;  %v350_v51 = vadd.f32 %v295_v45, %v294_v0  ;;  %v361_v59 = vadd.f32 %v360_v58, %v359_v55  ;;  %v302_v28 = vmul.f32 %v1000_v8, %v902_v4 }
  0x76   :  { %v311_v8 = vmul.f32 %v1034_v49, %v936_v11  ;;  %v320_v11 = vmul.f32 %v147_v5, %v962_v9  ;;  %v1358_v49 = vld [vmem:[#allocation17_spill] sm:$0xff]  ;;  %v1360_v5 = vld [vmem:[#allocation19_spill] sm:$0xff] }
  0x77   :  { %339 = vadd.xlane.f32.xlu0 %v338_v31  ;;  %v305_v31 = vmul.f32 %v998_v18, %v900_v54  ;;  %v356_v34 = vadd.f32 %v299_v20, %v298_v25  ;;  %v364_v53 = vadd.f32 %v303_v60, %v302_v28  ;;  %v306_v54 = vmul.f32 %v1016_v29, %v918_v38  ;;  %v1144_v28 = vld [vmem:[#allocation7 + $0x8] sm:$0xff]  ;;  %v1146_v60 = vld [vmem:[#allocation7] sm:$0xff] }
  0x78   :  { %v313_v18 = vmul.f32 %v1030_v62, %v932_v52  ;;  %v314_v52 = vmul.f32 %v1048_v2, %v950_v21  ;;  %v321_v29 = vmul.f32 %v148_v6, %v964_v47  ;;  %v1357_v62 = vld [vmem:[#allocation16_spill] sm:$0xff]  ;;  %v325_v50 = vmul.f32 %v152_v13, %v1358_v49 }
  0x79   :  { %348 = vadd.xlane.f32.xlu1 %v347_v33  ;;  %v367_v30 = vadd.f32 %v305_v31, %v304_v63  ;;  %v309_v33 = vmul.f32 %v1014_v16, %v916_v32  ;;  %v310_v32 = vmul.f32 %v1032_v17, %v934_v7  ;;  %v385_v7 = vadd.f32 %v317_v43, %v316_v44 }
  0x7a   :  { %v379_v38 = vadd.f32 %v313_v18, %v312_v61  ;;  %v324_v17 = vmul.f32 %v151_v10, %v1357_v62  ;;  %v391_v21 = vadd.f32 %v321_v29, %v320_v11  ;;  %v322_v2 = vmul.f32 %v149_v12, %v1359_v37 }
  0x7b   :  { %345 = vadd.xlane.f32.xlu0 %v344_v1  ;;  %v376_v48 = vadd.f32 %v311_v8, %v310_v32  ;;  %v398_v47 = vsel %vm234_vm0, %v325_v50, 0.0  ;;  %v323_v14 = vmul.f32 %v150_v42, %v1360_v5  ;;  %vm415_vm1 = vcmp.eq.s32.totalorder %v1144_v28, 1  ;;  %v1174_v8 = vld [vmem:[#allocation7 + $0x20] sm:$0xff] }
  0x7c   :  { %v397_v9 = vsel %vm234_vm0, %v324_v17, 0.0  ;;  %vm414_vm2 = vcmp.eq.s32.totalorder %v1146_v60, 1  ;;  %vm475_vm3 = vcmp.eq.s32.totalorder %v1144_v28, 2  ;;  %vm474_vm4 = vcmp.eq.s32.totalorder %v1146_v60, 2  ;;  %v1206_v17 = vld [vmem:[#allocation7 + $0x40] sm:$0xff] }
  0x7d   :  { %354 = vadd.xlane.f32.xlu1 %v353_v15  ;;  %v308_v15 = vmul.f32 %v1012_v3, %v914_v27  ;;  %v370_v27 = vadd.f32 %v307_v36, %v306_v54  ;;  %v1355_v3 = vld [vmem:[#allocation14_spill] sm:$0xff]  ;;  %v399_v6 = vadd.f32 %v398_v47, %v397_v9  ;;  %v394_v56 = vadd.f32 %v323_v14, %v322_v2 }
  0x7e   :  { %v315_v16 = vmul.f32 %v1050_v19, %v1355_v3  ;;  %v388_v19 = vadd.f32 %v319_v24, %v318_v57  ;;  %vm1339_vm11 = vcmp.eq.s32.totalorder %v1174_v8, 1  ;;  %v1185_v3 = vld [vmem:[#allocation7 + $0x38] sm:$0xff]  ;;  %vm1338_vm12 = vcmp.eq.s32.totalorder %v1174_v8, 2  ;;  %v1201_v24 = vld [vmem:[#allocation7 + $0x48] sm:$0xff]  ;;  %v1224_v47 = vld [vmem:[#allocation7 + $0x50] sm:$0xff] }
  0x7f   :  { %351 = vadd.xlane.f32.xlu0 %v350_v51  ;;  %v373_v4 = vadd.f32 %v309_v33, %v308_v15  ;;  %v1154_v33 = vld [vmem:[#allocation7 + $0x18] sm:$0xff]  ;;  %vm1340_vm13 = vcmp.eq.s32.totalorder %v1185_v3, 1  ;;  %vm1341_vm14 = vcmp.eq.s32.totalorder %v1185_v3, 2 }
  0x80   :  { %v382_v22 = vadd.f32 %v315_v16, %v314_v52  ;;  %vm417_vm5 = vcmp.eq.s32.totalorder %v1154_v33, 1  ;;  %vm477_vm7 = vcmp.eq.s32.totalorder %v1154_v33, 2 }
  0x81   :  { %362 = vadd.xlane.f32.xlu1 %v361_v59 }
  0x83   :  { %357 = vadd.xlane.f32.xlu0 %v356_v34 }
  0x85   :  { %368 = vadd.xlane.f32.xlu1 %v367_v30 }
  0x87   :  { %365 = vadd.xlane.f32.xlu0 %v364_v53  ;;  %v1157_v53 = vld [vmem:[#allocation7 + $0x10] sm:$0xff] }
  0x88   :  { %vm416_vm6 = vcmp.eq.s32.totalorder %v1157_v53, 1  ;;  %vm476_vm8 = vcmp.eq.s32.totalorder %v1157_v53, 2 }
  0x89   :  { %374 = vadd.xlane.f32.xlu1 %v373_v4 }
  0x8b   :  { %371 = vadd.xlane.f32.xlu0 %v370_v27  ;;  %v1169_v27 = vld [vmem:[#allocation7 + $0x28] sm:$0xff] }
  0x8c   :  { %vm419_vm9 = vcmp.eq.s32.totalorder %v1169_v27, 1  ;;  %vm1337_vm10 = vcmp.eq.s32.totalorder %v1169_v27, 2 }
  0x8d   :  { %380 = vadd.xlane.f32.xlu1 %v379_v38 }
  0x8f   :  { %377 = vadd.xlane.f32.xlu0 %v376_v48 }
  0x91   :  { %386 = vadd.xlane.f32.xlu1 %v385_v7  ;;  %v1190_v7 = vld [vmem:[#allocation7 + $0x30] sm:$0xff] }
  0x92   :  { %vm1343_vm15 = vcmp.eq.s32.totalorder %v1190_v7, 1  ;;  %vm1342_vm0 = vcmp.eq.s32.totalorder %v1190_v7, 2 }
  0x93   :  { %383 = vadd.xlane.f32.xlu0 %v382_v22 }
  0x95   :  { %392 = vadd.xlane.f32.xlu1 %v391_v21 }
  0x97   :  { %389 = vadd.xlane.f32.xlu0 %v388_v19  ;;  %v1219_v19 = vld [vmem:[#allocation7 + $0x58] sm:$0x7f] }
  0x99   :  { %400 = vadd.xlane.f32.xlu1 %v399_v6 }
  0x9b   :  { %395 = vadd.xlane.f32.xlu0 %v394_v56 }
  0xca   :  { %v209_v39 = vpop.xlane.xlu1 %208 }
  0xcb   :  { %v452_v43 = vsel %vm416_vm6, %v209_v39, -inf }
  0xcc   :  { %v203_v10 = vpop.xlane.xlu0 %202 }
  0xcd   :  { %v450_v4 = vsel %vm414_vm2, %v203_v10, -inf }
  0xce   :  { %v212_v13 = vpop.xlane.xlu1 %211 }
  0xcf   :  { %v453_v38 = vsel %vm417_vm5, %v212_v13, -inf }
  0xd0   :  { %v206_v40 = vpop.xlane.xlu0 %205 }
  0xd1   :  { %v451_v54 = vsel %vm415_vm1, %v206_v40, -inf }
  0xd2   :  { %v218_v41 = vpop.xlane.xlu1 %217 }
  0xd3   :  { %v455_v11 = vsel %vm419_vm9, %v218_v41, -inf }
  0xd4   :  { %v215_v12 = vpop.xlane.xlu0 %214 }
  0xd5   :  { %v454_v57 = vsel %vm1339_vm11, %v215_v12, -inf  ;;  %vm422_vm11 = vcmp.eq.s32.totalorder %v1206_v17, 1 }
  0xd6   :  { %v1112_v0 = vpop.xlane.xlu1 %223 }
  0xd7   :  { %v457_v49 = vsel %vm1340_vm13, %v1112_v0, -inf  ;;  %vm482_vm13 = vcmp.eq.s32.totalorder %v1206_v17, 2 }
  0xd8   :  { %v1114_v1 = vpop.xlane.xlu0 %220 }
  0xd9   :  { %v456_v21 = vsel %vm1343_vm15, %v1114_v1, -inf  ;;  %vm424_vm15 = vcmp.eq.s32.totalorder %v1224_v47, 1 }
  0xda   :  { %v1116_v45 = vpop.xlane.xlu1 %229 }
  0xdc   :  { %v1118_v46 = vpop.xlane.xlu0 %226 }
  0xdd   :  { %v458_v6 = vsel %vm422_vm11, %v1118_v46, -inf }
  0xde   :  { %v1120_v42 = vpop.xlane.xlu1 %238 }
  0xe0   :  { %v1122_v23 = vpop.xlane.xlu0 %232 }
  0xe1   :  { %v460_v41 = vsel %vm424_vm15, %v1122_v23, -inf }
  0xe2   :  { %v1124_v25 = vpop.xlane.xlu1 %244 }
  0xe4   :  { %v1126_v51 = vpop.xlane.xlu0 %241 }
  0xe6   :  { %v1128_v55 = vpop.xlane.xlu1 %250 }
  0xe8   :  { %v1130_v58 = vpop.xlane.xlu0 %247 }
  0xea   :  { %v1132_v26 = vpop.xlane.xlu1 %256 }
  0xeb   :  { %v467_v60 = vsel %vm419_vm9, %v1132_v26, -inf }
  0xec   :  { %v1134_v20 = vpop.xlane.xlu0 %253 }
  0xee   :  { %v1136_v59 = vpop.xlane.xlu1 %262 }
  0xf0   :  { %v1138_v63 = vpop.xlane.xlu0 %259 }
  0xf2   :  { %v1140_v31 = vpop.xlane.xlu1 %268 }
  0xf4   :  { %v1142_v34 = vpop.xlane.xlu0 %265 }
  0xf6   :  { %v1148_v30 = vpop.xlane.xlu1 %276 }
  0xf8   :  { %v1151_v15 = vpop.xlane.xlu0 %271 }
  0xfa   :  { %v331_v36 = vpop.xlane.xlu1 %330 }
  0xfb   :  { %v511_v61 = vsel %vm475_vm3, %v331_v36, %v451_v54 }
  0xfc   :  { %v328_v18 = vpop.xlane.xlu0 %327  ;;  %535 = vst [vmem:[#allocation8 + $0x8] sm:$0xff] %v511_v61 }
  0xfd   :  { %v510_v32 = vsel %vm474_vm4, %v328_v18, %v450_v4  ;;  %v465_v4 = vsel %vm417_vm5, %v1128_v55, -inf  ;;  %vm1365_vm5 = vcmp.eq.s32.totalorder %v1190_v7, 1 }
  0xfe   :  { %534 = vst [vmem:[#allocation8] sm:$0xff] %v510_v32  ;;  %v337_v44 = vpop.xlane.xlu1 %336  ;;  %v468_v26 = vsel %vm1365_vm5, %v1138_v63, -inf }
  0xff   :  { %v513_v48 = vsel %vm477_vm7, %v337_v44, %v453_v38 }
 0x100   :  { %v334_v52 = vpop.xlane.xlu0 %333  ;;  %537 = vst [vmem:[#allocation8 + $0x18] sm:$0xff] %v513_v48 }
 0x101   :  { %v512_v16 = vsel %vm476_vm8, %v334_v52, %v452_v43 }
 0x102   :  { %536 = vst [vmem:[#allocation8 + $0x10] sm:$0xff] %v512_v16  ;;  %v343_v29 = vpop.xlane.xlu1 %342 }
 0x103   :  { %v515_v22 = vsel %vm1337_vm10, %v343_v29, %v455_v11  ;;  %vm1344_vm10 = vcmp.eq.s32.totalorder %v1201_v24, 1 }
 0x104   :  { %v340_v35 = vpop.xlane.xlu0 %339  ;;  %539 = vst [vmem:[#allocation8 + $0x28] sm:$0xff] %v515_v22  ;;  %v459_v5 = vsel %vm1344_vm10, %v1116_v45, -inf  ;;  %vm484_vm10 = vcmp.eq.s32.totalorder %v1224_v47, 2  ;;  %v463_v45 = vsel %vm415_vm1, %v1124_v25, -inf  ;;  %v464_v25 = vsel %vm416_vm6, %v1130_v58, -inf }
 0x105   :  { %v514_v62 = vsel %vm1338_vm12, %v340_v35, %v454_v57  ;;  %vm483_vm12 = vcmp.eq.s32.totalorder %v1201_v24, 2  ;;  %vm1361_vm1 = vcmp.eq.s32.totalorder %v1174_v8, 1  ;;  %vm1366_vm6 = vcmp.eq.s32.totalorder %v1185_v3, 2 }
 0x106   :  { %538 = vst [vmem:[#allocation8 + $0x20] sm:$0xff] %v514_v62  ;;  %v349_v50 = vpop.xlane.xlu1 %348  ;;  %v466_v55 = vsel %vm1361_vm1, %v1134_v20, -inf }
 0x107   :  { %v517_v37 = vsel %vm1341_vm14, %v349_v50, %v457_v49  ;;  %vm425_vm14 = vcmp.eq.s32.totalorder %v1219_v19, 1 }
 0x108   :  { %v346_v2 = vpop.xlane.xlu0 %345  ;;  %541 = vst [vmem:[#allocation8 + $0x38] sm:$0xff] %v517_v37  ;;  %v461_v13 = vsel %vm425_vm14, %v1120_v42, -inf  ;;  %v462_v42 = vsel %vm414_vm2, %v1126_v51, -inf  ;;  %vm1362_vm2 = vcmp.eq.s32.totalorder %v1169_v27, 2 }
 0x109   :  { %v516_v9 = vsel %vm1342_vm0, %v346_v2, %v456_v21  ;;  %vm485_vm0 = vcmp.eq.s32.totalorder %v1219_v19, 2 }
 0x10a   :  { %540 = vst [vmem:[#allocation8 + $0x30] sm:$0xff] %v516_v9  ;;  %v355_v14 = vpop.xlane.xlu1 %354 }
 0x10b   :  { %v519_v56 = vsel %vm483_vm12, %v355_v14, %v459_v5 }
 0x10c   :  { %v352_v39 = vpop.xlane.xlu0 %351  ;;  %543 = vst [vmem:[#allocation8 + $0x48] sm:$0xff] %v519_v56 }
 0x10d   :  { %v518_v10 = vsel %vm482_vm13, %v352_v39, %v458_v6 }
 0x10e   :  { %542 = vst [vmem:[#allocation8 + $0x40] sm:$0xff] %v518_v10  ;;  %v363_v40 = vpop.xlane.xlu1 %362 }
 0x10f   :  { %v521_v12 = vsel %vm485_vm0, %v363_v40, %v461_v13 }
 0x110   :  { %v358_v0 = vpop.xlane.xlu0 %357  ;;  %545 = vst [vmem:[#allocation8 + $0x58] sm:$0x7f] %v521_v12 }
 0x111   :  { %v520_v1 = vsel %vm484_vm10, %v358_v0, %v460_v41 }
 0x112   :  { %544 = vst [vmem:[#allocation8 + $0x50] sm:$0xff] %v520_v1  ;;  %v369_v46 = vpop.xlane.xlu1 %368 }
 0x113   :  { %v523_v23 = vsel %vm475_vm3, %v369_v46, %v463_v45  ;;  %vm1363_vm3 = vcmp.eq.s32.totalorder %v1174_v8, 2 }
 0x114   :  { %v366_v54 = vpop.xlane.xlu0 %365  ;;  %547 = vst [vmem:[#allocation8 + $0x68] sm:$0xff] %v523_v23 }
 0x115   :  { %v522_v36 = vsel %vm474_vm4, %v366_v54, %v462_v42  ;;  %vm1364_vm4 = vcmp.eq.s32.totalorder %v1185_v3, 1 }
 0x116   :  { %546 = vst [vmem:[#allocation8 + $0x60] sm:$0xff] %v522_v36  ;;  %v375_v61 = vpop.xlane.xlu1 %374  ;;  %v469_v53 = vsel %vm1364_vm4, %v1136_v59, -inf  ;;  %v470_v59 = vsel %vm422_vm11, %v1142_v34, -inf  ;;  %v472_v34 = vsel %vm424_vm15, %v1151_v15, -inf }
 0x117   :  { %v525_v51 = vsel %vm477_vm7, %v375_v61, %v465_v4  ;;  %vm1367_vm7 = vcmp.eq.s32.totalorder %v1190_v7, 2 }
 0x118   :  { %v372_v28 = vpop.xlane.xlu0 %371  ;;  %549 = vst [vmem:[#allocation8 + $0x78] sm:$0xff] %v525_v51 }
 0x119   :  { %v524_v18 = vsel %vm476_vm8, %v372_v28, %v464_v25  ;;  %vm1368_vm8 = vcmp.eq.s32.totalorder %v1201_v24, 1 }
 0x11a   :  { %548 = vst [vmem:[#allocation8 + $0x70] sm:$0xff] %v524_v18  ;;  %v381_v32 = vpop.xlane.xlu1 %380  ;;  %v471_v8 = vsel %vm1368_vm8, %v1140_v31, -inf  ;;  %v473_v31 = vsel %vm425_vm14, %v1148_v30, -inf }
 0x11b   :  { %v527_v58 = vsel %vm1362_vm2, %v381_v32, %v467_v60 }
 0x11c   :  { %v378_v33 = vpop.xlane.xlu0 %377  ;;  %551 = vst [vmem:[#allocation8 + $0x88] sm:$0xff] %v527_v58 }
 0x11d   :  { %v526_v38 = vsel %vm1363_vm3, %v378_v33, %v466_v55 }
 0x11e   :  { %550 = vst [vmem:[#allocation8 + $0x80] sm:$0xff] %v526_v38  ;;  %v387_v44 = vpop.xlane.xlu1 %386 }
 0x11f   :  { %v529_v20 = vsel %vm1366_vm6, %v387_v44, %v469_v53 }
 0x120   :  { %v384_v27 = vpop.xlane.xlu0 %383  ;;  %553 = vst [vmem:[#allocation8 + $0x98] sm:$0xff] %v529_v20 }
 0x121   :  { %v528_v43 = vsel %vm1367_vm7, %v384_v27, %v468_v26 }
 0x122   :  { %552 = vst [vmem:[#allocation8 + $0x90] sm:$0xff] %v528_v43  ;;  %v393_v48 = vpop.xlane.xlu1 %392 }
 0x123   :  { %v531_v63 = vsel %vm483_vm12, %v393_v48, %v471_v8 }
 0x124   :  { %v390_v52 = vpop.xlane.xlu0 %389  ;;  %555 = vst [vmem:[#allocation8 + $0xa8] sm:$0xff] %v531_v63 }
 0x125   :  { %v530_v3 = vsel %vm482_vm13, %v390_v52, %v470_v59 }
 0x126   :  { %554 = vst [vmem:[#allocation8 + $0xa0] sm:$0xff] %v530_v3  ;;  %v401_v16 = vpop.xlane.xlu1 %400 }
 0x127   :  { %v533_v7 = vsel %vm485_vm0, %v401_v16, %v473_v31 }
 0x128   :  { %v396_v11 = vpop.xlane.xlu0 %395  ;;  %557 = vst [vmem:[#allocation8 + $0xb8] sm:$0x7f] %v533_v7 }
 0x129   :  { %v532_v29 = vsel %vm484_vm10, %v396_v11, %v472_v34 }
 0x12a   :  { %556 = vst [vmem:[#allocation8 + $0xb0] sm:$0xff] %v532_v29 }
 0x12b   :  { %661 = shalt.err (!%p658_p0)
}
 0x12c   :  { %s662_s27 = scalar_lea.hbm %s1328_s3, 3072 }
 0x12d   :  { %p663_p1 = scmp.ne.s32.totalorder %s1328_s3, %s662_s27  ;;  %p666_p2 = scmp.lt.u32.totalorder %s662_s27, %s1328_s3 }
 0x12f   :  { %p668_p3 = pnand %p666_p2, %p663_p1 }
 0x131   :  { %671 = shalt.err (!%p668_p3)
}
 0x132   :  { %569 = dma.vmem_to_hbm [thread:$0]  %s564_s23, 3072, %s1328_s3, [#allocation4], %s683_s0, %s683_s0, %s684_s15  }
 0x133   :  { %676 = dma.done.wait [#allocation4], 3072  }
 0x134   :  { %677 = vsyncadd [#allocation4], 4294964224 }
 0x135   :  { %573 = vsyncpa [#allocation3], 1 }
 0x136   :  { %574 = vsyncpa [#allocation6], 1 }
 0x137   :  { %575 = vsyncpa [#allocation4], 1 }

</bundles_post_ra>
